<compile_context>
chip_gen: v6e
topology: v6e:2x2x1
jax: 0.10.0
libtpu: 0.0.40
codegen_flags: <defaults>
</compile_context>

<pallas_src>
import jax
import jax.numpy as jnp
from jax.experimental import pallas as pl
from jax.experimental.pallas import tpu as pltpu

REG_LAMBDA = 0.3          # LargeMarginSoftmax default (deg_logit=None, reduction='mean')
_NEG = -1.0e30            # "minus infinity"; exp() underflows to exactly 0


def _make_kernel(n_true: int, C: int):
    inv_cm1 = 1.0 / (C - 1)   # Python float -> literal inside the kernel

    def kernel(s1_ref, s2_ref, tgt_ref, out_ref):
        i = pl.program_id(0)
        tile_n = s1_ref.shape[0]

        # Valid-row mask: the last tile may overhang when n_true % tile_n != 0.
        row_ids = i * tile_n + jax.lax.broadcasted_iota(jnp.int32, (tile_n, 1), 0)
        valid = row_ids < n_true                                   # (tile_n, 1) bool

        tgt = tgt_ref[...]                                         # (tile_n, 1) int32
        cols = jax.lax.broadcasted_iota(jnp.int32, (tile_n, C), 1)
        mask_b = cols == tgt                                       # one-hot target mask (bool)

        def loss_sums(x_raw):
            """Returns (sum_ce, sum_reg) over the valid rows of this tile."""
            x = x_raw.astype(jnp.float32)

            # Non-target row max and target logit (row-local reductions only).
            mX = jnp.max(jnp.where(mask_b, _NEG, x), axis=1, keepdims=True)
            x_t = jnp.sum(jnp.where(mask_b, x, 0.0), axis=1, keepdims=True)
            m = jnp.maximum(mX, x_t)                               # full row max, no extra reduction

            d = x - mX                                             # reused for exp arg and log_softmax
            eX = jnp.exp(jnp.where(mask_b, _NEG, d))               # target column -> exactly 0
            sX = jnp.sum(eX, axis=1, keepdims=True)                # >= 1
            log_sX = jnp.log(sX)

            # Cross entropy: full logsumexp reconstructed from the non-target sum.
            s_full = jnp.exp(mX - m) * sX + jnp.exp(x_t - m)
            ce = m + jnp.log(s_full) - x_t                         # (tile_n, 1)

            # Large-margin regularizer over non-target classes.
            sm = eX * pl.reciprocal(sX, approx=True)               # softmax(X); target col == 0
            lsm = d - log_sX                                       # log_softmax(X); target col masked below
            reg = 0.5 * jnp.sum(
                jnp.where(mask_b, 0.0, (sm - inv_cm1) * lsm),
                axis=1, keepdims=True)                             # (tile_n, 1)

            # Row-level SELECT (not multiply): padded-row garbage/NaN is discarded.
            ce_sum = jnp.sum(jnp.where(valid, ce, 0.0))
            reg_sum = jnp.sum(jnp.where(valid, reg, 0.0))
            return ce_sum, reg_sum

        ce1, reg1 = loss_sums(s1_ref[...])
        ce2, reg2 = loss_sums(s2_ref[...])
        partial = (ce1 + ce2) + REG_LAMBDA * (reg1 + reg2)         # scalar sum over this tile

        # Lane-broadcast partial into this tile's own output row (parallel-safe).
        out_ref[...] = jnp.full(out_ref.shape, partial, dtype=jnp.float32)

    return kernel


def _per_row_vmem_bytes(C: int, itemsize: int) -> int:
    # 2 inputs x 2 pipeline buffers in native dtype + ~6 f32 (tile_n, C) temporaries
    # materialized by the body (x, masked x, eX, sm, lsm, masked reg term).
    return 2 * 2 * C * itemsize + 6 * C * 4


def _choose_tile_n(N: int, C: int, itemsize: int) -> int:
    # Keep the whole per-step footprint (DMA buffers + f32 temporaries) under ~28 MiB
    # so it fits v7x's 32 MiB default scoped VMEM with headroom (and trivially fits
    # the 128 MiB parts), while allowing large tiles for small C so each grid step
    # streams multiple MiB of logits.
    budget = 28 * 1024 * 1024
    per_row = _per_row_vmem_bytes(C, itemsize)
    tile = budget // max(per_row, 1)
    sublane = max(8, 32 // max(itemsize, 1))     # 8 for f32, 16 for bf16, 32 for int8/fp8
    tile = max(sublane, min(8192, (tile // sublane) * sublane))
    return int(min(tile, N))                     # == N (full dim) if N is small


def total_large_margin_cross_entropy(s1, s2, target, *, tile_n=None):
    """Scalar total loss = LargeMarginSoftmax(s1, t) + LargeMarginSoftmax(s2, t)."""
    N, C = s1.shape
    assert C >= 2, "LargeMarginSoftmax regularizer requires at least 2 classes"
    itemsize = jnp.dtype(s1.dtype).itemsize
    if tile_n is None:
        tile_n = _choose_tile_n(N, C, itemsize)
    tile_n = int(min(tile_n, N))
    num_tiles = int(pl.cdiv(N, tile_n))

    tgt2d = target.astype(jnp.int32).reshape(N, 1)

    per_row = _per_row_vmem_bytes(C, itemsize)
    vmem_limit = int(min(100 * 1024 * 1024,
                         max(32 * 1024 * 1024, per_row * tile_n + (8 << 20))))

    cost = pl.CostEstimate(
        flops=2 * N * C * 11,                         # ~11 VALU ops / element / tensor
        transcendentals=2 * (N * C + 5 * N),          # one exp pass + per-row exp/log/recip, x2 tensors
        bytes_accessed=2 * N * C * itemsize + N * 4 + num_tiles * 128 * 4,
    )

    partials = pl.pallas_call(
        _make_kernel(N, C),
        out_shape=jax.ShapeDtypeStruct((num_tiles, 128), jnp.float32),
        grid=(num_tiles,),
        in_specs=[
            pl.BlockSpec((tile_n, C), lambda i: (i, 0)),
            pl.BlockSpec((tile_n, C), lambda i: (i, 0)),
            pl.BlockSpec((tile_n, 1), lambda i: (i, 0)),
        ],
        out_specs=pl.BlockSpec((1, 128), lambda i: (i, 0)),
        compiler_params=pltpu.CompilerParams(
            dimension_semantics=("parallel",),        # independent per-tile partials (megacore on v7x)
            vmem_limit_bytes=vmem_limit,
        ),
        cost_estimate=cost,
    )(s1, s2, tgt2d)                                  # native dtype in; f32 cast happens in-kernel

    # Final reduction + mean over the true batch size in the wrapper.
    return jnp.sum(partials[:, 0]) * (1.0 / N)


def _reference(s1, s2, target):
    """Pure-JAX reference with the original PyTorch formulation (sanity check)."""
    def lm_loss(x, t):
        x = x.astype(jnp.float32)
        N, C = x.shape
        mask = jax.nn.one_hot(t, C, dtype=jnp.float32)
        m = jnp.max(x, axis=1, keepdims=True)
        lse = m + jnp.log(jnp.sum(jnp.exp(x - m), axis=1, keepdims=True))
        ce = jnp.mean(jnp.sum((lse - x) * mask, axis=1))
        X = x - 1.0e6 * mask
        mX = jnp.max(X, axis=1, keepdims=True)
        eX = jnp.exp(X - mX)
        sX = jnp.sum(eX, axis=1, keepdims=True)
        sm = eX / sX
        lsm = (X - mX) - jnp.log(sX)
        reg = jnp.mean(0.5 * jnp.sum((sm - 1.0 / (C - 1)) * lsm * (1.0 - mask), axis=1))
        return ce + REG_LAMBDA * reg
    return lm_loss(s1, target) + lm_loss(s2, target)


if __name__ == "__main__":
    key = jax.random.PRNGKey(0)
    k1, k2, k3 = jax.random.split(key, 3)

    # Case 1: small single-tile problem (auto tile size).
    N, C = 16, 32
    s1 = jax.random.normal(k1, (N, C), dtype=jnp.float32)
    s2 = jax.random.normal(k2, (N, C), dtype=jnp.float32)
    target = jax.random.randint(k3, (N,), 0, C, dtype=jnp.int32)

    loss = jax.block_until_ready(total_large_margin_cross_entropy(s1, s2, target))
    ref = _reference(s1, s2, target)
    assert jnp.allclose(loss, ref, rtol=1e-3, atol=1e-3), (loss, ref)

    # Case 2: multi-tile parallel partials with a ragged last tile (valid-row masking).
    N2, C2 = 12, 20
    s1b = jax.random.normal(jax.random.PRNGKey(1), (N2, C2), dtype=jnp.float32)
    s2b = jax.random.normal(jax.random.PRNGKey(2), (N2, C2), dtype=jnp.float32)
    tb = jax.random.randint(jax.random.PRNGKey(3), (N2,), 0, C2, dtype=jnp.int32)

    loss_b = jax.block_until_ready(
        total_large_margin_cross_entropy(s1b, s2b, tb, tile_n=8))
    ref_b = _reference(s1b, s2b, tb)
    assert jnp.allclose(loss_b, ref_b, rtol=1e-3, atol=1e-3), (loss_b, ref_b)

    # Case 3: native bf16 logits (halved HBM bytes path; f32 math in-kernel).
    s1c = s1.astype(jnp.bfloat16)
    s2c = s2.astype(jnp.bfloat16)
    loss_c = jax.block_until_ready(total_large_margin_cross_entropy(s1c, s2c, target))
    ref_c = _reference(s1c, s2c, target)
    assert jnp.allclose(loss_c, ref_c, rtol=2e-2, atol=2e-2), (loss_c, ref_c)

    print("KERNEL_OK")
</pallas_src>

<mosaic_0001>
module attributes {stable_mosaic.version = 11 : i64} {
  func.func @kernel(%arg0: i32, %arg1: memref<16x32xf32, #tpu.memory_space<vmem>>, %arg2: memref<16x32xf32, #tpu.memory_space<vmem>>, %arg3: memref<16x1xi32, #tpu.memory_space<vmem>>, %arg4: memref<1x128xf32, #tpu.memory_space<vmem>>) attributes {dimension_semantics = [#tpu.dimension_semantics<parallel>], iteration_bounds = array<i64: 1>, scalar_prefetch = 0 : i64, scratch_operands = 0 : i64, tpu.core_type = #tpu.core_type<tc>, window_params = [{transform_indices = @transform_0, window_bounds = array<i64: 16, 32>}, {transform_indices = @transform_1, window_bounds = array<i64: 16, 32>}, {transform_indices = @transform_2, window_bounds = array<i64: 16, 1>}, {transform_indices = @transform_3, window_bounds = array<i64: 1, 128>}]} {
    %c16_i32 = arith.constant 16 : i32
    %0 = arith.muli %arg0, %c16_i32 : i32
    %1 = tpu.iota {dimensions = array<i32: 0>} : vector<16x1xi32>
    %2 = vector.broadcast %0 : i32 to vector<16x1xi32>
    %3 = arith.addi %2, %1 : vector<16x1xi32>
    %c16_i32_0 = arith.constant 16 : i32
    %4 = vector.broadcast %c16_i32_0 : i32 to vector<16x1xi32>
    %5 = arith.cmpi slt, %3, %4 : vector<16x1xi32>
    %c0 = arith.constant 0 : index
    %c0_1 = arith.constant 0 : index
    %6 = vector.load %arg3[%c0, %c0_1] : memref<16x1xi32, #tpu.memory_space<vmem>>, vector<16x1xi32>
    %7 = tpu.iota {dimensions = array<i32: 1>} : vector<16x32xi32>
    %8 = vector.broadcast %6 : vector<16x1xi32> to vector<16x32xi32>
    %9 = arith.cmpi eq, %7, %8 : vector<16x32xi32>
    %c0_2 = arith.constant 0 : index
    %c0_3 = arith.constant 0 : index
    %10 = vector.load %arg1[%c0_2, %c0_3] : memref<16x32xf32, #tpu.memory_space<vmem>>, vector<16x32xf32>
    %cst = arith.constant -1.000000e+30 : f32
    %11 = vector.broadcast %cst : f32 to vector<16x32xf32>
    %12 = arith.select %9, %11, %10 : vector<16x32xi1>, vector<16x32xf32>
    %cst_4 = arith.constant dense<0xFF800000> : vector<16xf32>
    %13 = vector.multi_reduction <maximumf>, %12, %cst_4 [1] : vector<16x32xf32> to vector<16xf32>
    %14 = vector.shape_cast %13 : vector<16xf32> to vector<16x1xf32>
    %cst_5 = arith.constant 0.000000e+00 : f32
    %15 = vector.broadcast %cst_5 : f32 to vector<16x32xf32>
    %16 = arith.select %9, %10, %15 : vector<16x32xi1>, vector<16x32xf32>
    %cst_6 = arith.constant dense<0.000000e+00> : vector<16xf32>
    %17 = vector.multi_reduction <add>, %16, %cst_6 [1] : vector<16x32xf32> to vector<16xf32>
    %18 = vector.shape_cast %17 : vector<16xf32> to vector<16x1xf32>
    %19 = arith.maximumf %14, %18 : vector<16x1xf32>
    %20 = vector.broadcast %14 : vector<16x1xf32> to vector<16x32xf32>
    %21 = arith.subf %10, %20 : vector<16x32xf32>
    %cst_7 = arith.constant -1.000000e+30 : f32
    %22 = vector.broadcast %cst_7 : f32 to vector<16x32xf32>
    %23 = arith.select %9, %22, %21 : vector<16x32xi1>, vector<16x32xf32>
    %24 = math.exp %23 : vector<16x32xf32>
    %cst_8 = arith.constant dense<0.000000e+00> : vector<16xf32>
    %25 = vector.multi_reduction <add>, %24, %cst_8 [1] : vector<16x32xf32> to vector<16xf32>
    %26 = vector.shape_cast %25 : vector<16xf32> to vector<16x1xf32>
    %27 = math.log %26 : vector<16x1xf32>
    %28 = arith.subf %14, %19 : vector<16x1xf32>
    %29 = math.exp %28 : vector<16x1xf32>
    %30 = arith.mulf %29, %26 : vector<16x1xf32>
    %31 = arith.subf %18, %19 : vector<16x1xf32>
    %32 = math.exp %31 : vector<16x1xf32>
    %33 = arith.addf %30, %32 : vector<16x1xf32>
    %34 = math.log %33 : vector<16x1xf32>
    %35 = arith.addf %19, %34 : vector<16x1xf32>
    %36 = arith.subf %35, %18 : vector<16x1xf32>
    %37 = tpu.reciprocal %26 {approx = true} : vector<16x1xf32> -> vector<16x1xf32>
    %38 = vector.broadcast %37 : vector<16x1xf32> to vector<16x32xf32>
    %39 = arith.mulf %24, %38 : vector<16x32xf32>
    %40 = vector.broadcast %27 : vector<16x1xf32> to vector<16x32xf32>
    %41 = arith.subf %21, %40 : vector<16x32xf32>
    %cst_9 = arith.constant 0.0322580636 : f32
    %42 = vector.broadcast %cst_9 : f32 to vector<16x32xf32>
    %43 = arith.subf %39, %42 : vector<16x32xf32>
    %44 = arith.mulf %43, %41 : vector<16x32xf32>
    %cst_10 = arith.constant 0.000000e+00 : f32
    %45 = vector.broadcast %cst_10 : f32 to vector<16x32xf32>
    %46 = arith.select %9, %45, %44 : vector<16x32xi1>, vector<16x32xf32>
    %cst_11 = arith.constant dense<0.000000e+00> : vector<16xf32>
    %47 = vector.multi_reduction <add>, %46, %cst_11 [1] : vector<16x32xf32> to vector<16xf32>
    %48 = vector.shape_cast %47 : vector<16xf32> to vector<16x1xf32>
    %cst_12 = arith.constant 5.000000e-01 : f32
    %49 = vector.broadcast %cst_12 : f32 to vector<16x1xf32>
    %50 = arith.mulf %49, %48 : vector<16x1xf32>
    %cst_13 = arith.constant 0.000000e+00 : f32
    %51 = vector.broadcast %cst_13 : f32 to vector<16x1xf32>
    %52 = arith.select %5, %36, %51 : vector<16x1xi1>, vector<16x1xf32>
    %53 = vector.shape_cast %52 : vector<16x1xf32> to vector<1x16x1xf32>
    %cst_14 = arith.constant dense<0.000000e+00> : vector<1xf32>
    %54 = vector.multi_reduction <add>, %53, %cst_14 [1, 2] : vector<1x16x1xf32> to vector<1xf32>
    %55 = vector.shape_cast %54 : vector<1xf32> to vector<1x1x1xf32>
    %56 = vector.extract %55[0, 0, 0] : f32 from vector<1x1x1xf32>
    %cst_15 = arith.constant 0.000000e+00 : f32
    %57 = vector.broadcast %cst_15 : f32 to vector<16x1xf32>
    %58 = arith.select %5, %50, %57 : vector<16x1xi1>, vector<16x1xf32>
    %59 = vector.shape_cast %58 : vector<16x1xf32> to vector<1x16x1xf32>
    %cst_16 = arith.constant dense<0.000000e+00> : vector<1xf32>
    %60 = vector.multi_reduction <add>, %59, %cst_16 [1, 2] : vector<1x16x1xf32> to vector<1xf32>
    %61 = vector.shape_cast %60 : vector<1xf32> to vector<1x1x1xf32>
    %62 = vector.extract %61[0, 0, 0] : f32 from vector<1x1x1xf32>
    %c0_17 = arith.constant 0 : index
    %c0_18 = arith.constant 0 : index
    %63 = vector.load %arg2[%c0_17, %c0_18] : memref<16x32xf32, #tpu.memory_space<vmem>>, vector<16x32xf32>
    %cst_19 = arith.constant -1.000000e+30 : f32
    %64 = vector.broadcast %cst_19 : f32 to vector<16x32xf32>
    %65 = arith.select %9, %64, %63 : vector<16x32xi1>, vector<16x32xf32>
    %cst_20 = arith.constant dense<0xFF800000> : vector<16xf32>
    %66 = vector.multi_reduction <maximumf>, %65, %cst_20 [1] : vector<16x32xf32> to vector<16xf32>
    %67 = vector.shape_cast %66 : vector<16xf32> to vector<16x1xf32>
    %cst_21 = arith.constant 0.000000e+00 : f32
    %68 = vector.broadcast %cst_21 : f32 to vector<16x32xf32>
    %69 = arith.select %9, %63, %68 : vector<16x32xi1>, vector<16x32xf32>
    %cst_22 = arith.constant dense<0.000000e+00> : vector<16xf32>
    %70 = vector.multi_reduction <add>, %69, %cst_22 [1] : vector<16x32xf32> to vector<16xf32>
    %71 = vector.shape_cast %70 : vector<16xf32> to vector<16x1xf32>
    %72 = arith.maximumf %67, %71 : vector<16x1xf32>
    %73 = vector.broadcast %67 : vector<16x1xf32> to vector<16x32xf32>
    %74 = arith.subf %63, %73 : vector<16x32xf32>
    %cst_23 = arith.constant -1.000000e+30 : f32
    %75 = vector.broadcast %cst_23 : f32 to vector<16x32xf32>
    %76 = arith.select %9, %75, %74 : vector<16x32xi1>, vector<16x32xf32>
    %77 = math.exp %76 : vector<16x32xf32>
    %cst_24 = arith.constant dense<0.000000e+00> : vector<16xf32>
    %78 = vector.multi_reduction <add>, %77, %cst_24 [1] : vector<16x32xf32> to vector<16xf32>
    %79 = vector.shape_cast %78 : vector<16xf32> to vector<16x1xf32>
    %80 = math.log %79 : vector<16x1xf32>
    %81 = arith.subf %67, %72 : vector<16x1xf32>
    %82 = math.exp %81 : vector<16x1xf32>
    %83 = arith.mulf %82, %79 : vector<16x1xf32>
    %84 = arith.subf %71, %72 : vector<16x1xf32>
    %85 = math.exp %84 : vector<16x1xf32>
    %86 = arith.addf %83, %85 : vector<16x1xf32>
    %87 = math.log %86 : vector<16x1xf32>
    %88 = arith.addf %72, %87 : vector<16x1xf32>
    %89 = arith.subf %88, %71 : vector<16x1xf32>
    %90 = tpu.reciprocal %79 {approx = true} : vector<16x1xf32> -> vector<16x1xf32>
    %91 = vector.broadcast %90 : vector<16x1xf32> to vector<16x32xf32>
    %92 = arith.mulf %77, %91 : vector<16x32xf32>
    %93 = vector.broadcast %80 : vector<16x1xf32> to vector<16x32xf32>
    %94 = arith.subf %74, %93 : vector<16x32xf32>
    %cst_25 = arith.constant 0.0322580636 : f32
    %95 = vector.broadcast %cst_25 : f32 to vector<16x32xf32>
    %96 = arith.subf %92, %95 : vector<16x32xf32>
    %97 = arith.mulf %96, %94 : vector<16x32xf32>
    %cst_26 = arith.constant 0.000000e+00 : f32
    %98 = vector.broadcast %cst_26 : f32 to vector<16x32xf32>
    %99 = arith.select %9, %98, %97 : vector<16x32xi1>, vector<16x32xf32>
    %cst_27 = arith.constant dense<0.000000e+00> : vector<16xf32>
    %100 = vector.multi_reduction <add>, %99, %cst_27 [1] : vector<16x32xf32> to vector<16xf32>
    %101 = vector.shape_cast %100 : vector<16xf32> to vector<16x1xf32>
    %cst_28 = arith.constant 5.000000e-01 : f32
    %102 = vector.broadcast %cst_28 : f32 to vector<16x1xf32>
    %103 = arith.mulf %102, %101 : vector<16x1xf32>
    %cst_29 = arith.constant 0.000000e+00 : f32
    %104 = vector.broadcast %cst_29 : f32 to vector<16x1xf32>
    %105 = arith.select %5, %89, %104 : vector<16x1xi1>, vector<16x1xf32>
    %106 = vector.shape_cast %105 : vector<16x1xf32> to vector<1x16x1xf32>
    %cst_30 = arith.constant dense<0.000000e+00> : vector<1xf32>
    %107 = vector.multi_reduction <add>, %106, %cst_30 [1, 2] : vector<1x16x1xf32> to vector<1xf32>
    %108 = vector.shape_cast %107 : vector<1xf32> to vector<1x1x1xf32>
    %109 = vector.extract %108[0, 0, 0] : f32 from vector<1x1x1xf32>
    %cst_31 = arith.constant 0.000000e+00 : f32
    %110 = vector.broadcast %cst_31 : f32 to vector<16x1xf32>
    %111 = arith.select %5, %103, %110 : vector<16x1xi1>, vector<16x1xf32>
    %112 = vector.shape_cast %111 : vector<16x1xf32> to vector<1x16x1xf32>
    %cst_32 = arith.constant dense<0.000000e+00> : vector<1xf32>
    %113 = vector.multi_reduction <add>, %112, %cst_32 [1, 2] : vector<1x16x1xf32> to vector<1xf32>
    %114 = vector.shape_cast %113 : vector<1xf32> to vector<1x1x1xf32>
    %115 = vector.extract %114[0, 0, 0] : f32 from vector<1x1x1xf32>
    %116 = arith.addf %56, %109 : f32
    %117 = arith.addf %62, %115 : f32
    %cst_33 = arith.constant 3.000000e-01 : f32
    %118 = arith.mulf %cst_33, %117 : f32
    %119 = arith.addf %116, %118 : f32
    %120 = vector.broadcast %119 : f32 to vector<1x128xf32>
    %c0_34 = arith.constant 0 : index
    %c0_35 = arith.constant 0 : index
    %121 = vector.load %arg4[%c0_34, %c0_35] : memref<1x128xf32, #tpu.memory_space<vmem>>, vector<1x128xf32>
    tpu.vector_store %arg4[%c0_34, %c0_35], %120 {strides = array<i32>} : memref<1x128xf32, #tpu.memory_space<vmem>>, vector<1x128xf32>,
    return
  }
  func.func @transform_0(%arg0: i32) -> (i32, i32) {
    %c0_i32 = arith.constant 0 : i32
    %c0_i32_0 = arith.constant 0 : i32
    return %arg0, %c0_i32 : i32, i32
  }
  func.func @transform_1(%arg0: i32) -> (i32, i32) {
    %c0_i32 = arith.constant 0 : i32
    %c0_i32_0 = arith.constant 0 : i32
    return %arg0, %c0_i32 : i32, i32
  }
  func.func @transform_2(%arg0: i32) -> (i32, i32) {
    %c0_i32 = arith.constant 0 : i32
    %c0_i32_0 = arith.constant 0 : i32
    return %arg0, %c0_i32 : i32, i32
  }
  func.func @transform_3(%arg0: i32) -> (i32, i32) {
    %c0_i32 = arith.constant 0 : i32
    %c0_i32_0 = arith.constant 0 : i32
    return %arg0, %c0_i32 : i32, i32
  }
}

</mosaic_0001>

<bundles_post_ra>
// kernel: tpu_custom_call.1
= control target key start
LH: loop header
LB: loop body
LE: loop exit
PB: predicated region body
PF: predicated region fallthrough
CT: control target
= control target key end

     0   :  { %8 = vsyncpa [#allocation3], 0  ;;  %s609_s0 = inlined_call_operand.vmem [shape: f32[16,32], index: 0, kind: input, shape index: {}]   ;;  %s610_s1 = inlined_call_operand.hbm [shape: f32[16,32], index: 1, kind: input, shape index: {}]   ;;  %s611_s2 = inlined_call_operand.vmem [shape: s32[16,1], index: 2, kind: input, shape index: {}]   ;;  %s612_s3 = inlined_call_operand.hbm [shape: f32[1,128], index: 3, kind: output, shape index: {}]  }
   0x1   :  { %9 = vsyncpa [#allocation4], 0  ;;  %s403_s12 = smov [#allocation2]  }
   0x2   :  { %s17_s13 = sshll.u32 %s403_s12, 4  ;;  %s18_s13 = int_to_ptr.vmem [resolvable:$true] %s17_s13 }
   0x3   :  { %s367_s14 = scalar_lea.vmem %s18_s13, 256  ;;  %p372_p1 = scmp.lt.s32.totalorder %s18_s13, %s18_s13 }
   0x4   :  { %p368_p0 = scmp.ne.s32.totalorder %s18_s13, %s367_s14  ;;  %p373_p2 = scmp.lt.s32.totalorder %s367_s14, %s367_s14 }
   0x6   :  { %p374_p3 = por %p373_p2, %p372_p1 }
   0x8   :  { %p375_p4 = pnand %p374_p3, %p368_p0 }
   0xa   :  { %378 = shalt.err (!%p375_p4)
}
   0xb   :  { %s404_s15 = smov 128   ;;  %s405_s16 = smov 8  }
   0xc   :  { %23 = dma.hbm_to_vmem [thread:$0]  %s610_s1, 256, %s18_s13, [#allocation3], %s404_s15, %s404_s15, %s405_s16  }
   0xd   :  { %399 = dma.done.wait [#allocation3], 256  }
   0xe   :  { %400 = vsyncadd [#allocation3], 4294967040  ;;  %v406_v0 = vmov 0   ;;  %v38_v1 = vld [vmem:[%s611_s2] sm:$0xff]  ;;  %v39_v2 = vld [vmem:[%s611_s2 + $0x8] sm:$0xff]  ;;  %v40_v3 = vlaneseq  ;;  %vm54_vm0 = vcmask 261120  }
   0xf   :  { %310 = vset.pattern.permute.xlu0 %v406_v0  ;;  %v437_v5 = vld [vmem:[#allocation2] sm:$0xff]  ;;  %v163_v13 = vld [vmem:[#allocation2 + $0x8] sm:$0xff]  ;;  %vm135_vm3 = vcmask 7168   ;;  %s407_s29 = smov [#allocation5]  }
  0x10   :  { %43 = vperm.xlu0 %310, %v38_v1   ;;  %v41_v4 = vand.u32 127, %v40_v3  ;;  %v50_v6 = vld [vmem:[%s609_s0] sm:$0xff]  ;;  %v51_v14 = vld [vmem:[%s609_s0 + $0x8] sm:$0xff]  ;;  %s284_s30 = sshll.u32 %s407_s29, 4  ;;  %s285_s30 = int_to_ptr.vmem [resolvable:$true] %s284_s30 }
  0x11   :  { %s379_s7 = scalar_lea.vmem %s285_s30, 16  ;;  %s383_s8 = scalar_lea.vmem %s285_s30, 32 }
  0x12   :  { %p380_p5 = scmp.ne.s32.totalorder %s285_s30, %s379_s7  ;;  %p384_p6 = scmp.lt.s32.totalorder %s285_s30, %s285_s30 }
  0x13   :  { %p385_p7 = scmp.lt.s32.totalorder %s383_s8, %s379_s7 }
  0x14   :  { %46 = vperm.xlu0 %310, %v39_v2  }
  0x15   :  { %p386_p8 = por %p385_p7, %p384_p6 }
  0x17   :  { %p387_p9 = pnand %p386_p8, %p380_p5 }
  0x8b   :  { %v44_v7 = vpop.permute.xlu0 %43 }
  0x8c   :  { %vm442_vm1 = vcmp.eq.s32.totalorder %v41_v4, %v44_v7 }
  0x8d   :  { %v164_v9 = vsel %vm442_vm1, -1e+30, %v437_v5  ;;  %v52_v10 = vsel %vm442_vm1, -1e+30, %v50_v6  ;;  %v61_v47 = vsel %vm442_vm1, %v50_v6, 0.0  ;;  %v172_v51 = vsel %vm442_vm1, %v437_v5, 0.0 }
  0x8e   :  { %v166_v11 = vsel %vm54_vm0, %v164_v9, -inf  ;;  %v55_v12 = vsel %vm54_vm0, %v52_v10, -inf  ;;  %v63_v48 = vsel %vm54_vm0, %v61_v47, 0.0  ;;  %v174_v52 = vsel %vm54_vm0, %v172_v51, 0.0 }
  0x8f   :  { %167 = vmax.xlane.f32.xlu0 %v166_v11  ;;  %56 = vmax.xlane.f32.xlu1 %v55_v12  ;;  %v47_v15 = vpop.permute.xlu0 %46 }
  0x90   :  { %vm456_vm2 = vcmp.eq.s32.totalorder %v41_v4, %v47_v15 }
  0x91   :  { %v173_v17 = vsel %vm456_vm2, %v163_v13, 0.0  ;;  %v53_v18 = vsel %vm456_vm2, -1e+30, %v51_v14  ;;  %v165_v21 = vsel %vm456_vm2, -1e+30, %v163_v13  ;;  %v62_v49 = vsel %vm456_vm2, %v51_v14, 0.0 }
  0x92   :  { %v177_v19 = vsel %vm54_vm0, %v173_v17, 0.0  ;;  %v58_v20 = vsel %vm54_vm0, %v53_v18, -inf  ;;  %v169_v22 = vsel %vm54_vm0, %v165_v21, -inf  ;;  %v66_v50 = vsel %vm54_vm0, %v62_v49, 0.0 }
  0x93   :  { %178 = vadd.xlane.f32.xlu0 %v177_v19  ;;  %59 = vmax.xlane.f32.xlu1 %v58_v20 }
  0x97   :  { %170 = vmax.xlane.f32.xlu1 %v169_v22 }
 0x118   :  { %v469_v23 = vpop.xlane.xlu1 %56  ;;  %v471_v24 = vpop.xlane.xlu0 %167 }
 0x119   :  { %v474_v25 = vsub.f32 %v50_v6, %v469_v23  ;;  %v478_v26 = vsub.f32 %v437_v5, %v471_v24 }
 0x11b   :  { %v73_v27 = vsel %vm442_vm1, -1e+30, %v474_v25  ;;  %v184_v30 = vsel %vm442_vm1, -1e+30, %v478_v26 }
 0x11c   :  { %v75_v28 = vmul.f32 1.442695, %v73_v27  ;;  %v483_v29 = vpop.xlane.xlu1 %59  ;;  %v186_v33 = vmul.f32 1.442695, %v184_v30  ;;  %v525_v55 = vpop.xlane.xlu0 %178 }
 0x11d   :  { %v489_v31 = vsub.f32 %v51_v14, %v483_v29 }
 0x11e   :  { %311 = vpow2.f32 %v75_v28 }
 0x11f   :  { %v74_v32 = vsel %vm456_vm2, -1e+30, %v489_v31 }
 0x120   :  { %v77_v34 = vmul.f32 1.442695, %v74_v32  ;;  %v171_v35 = vpop.xlane.xlu1 %170 }
 0x121   :  { %v494_v36 = vsub.f32 %v163_v13, %v171_v35  ;;  %v529_v56 = vmax.f32 %v171_v35, %v525_v55 }
 0x122   :  { %313 = vpow2.f32 %v77_v34 }
 0x123   :  { %v185_v37 = vsel %vm456_vm2, -1e+30, %v494_v36  ;;  %315 = vpow2.f32 %v186_v33  ;;  %v201_v58 = vsub.f32 %v171_v35, %v529_v56  ;;  %v209_v62 = vsub.f32 %v525_v55, %v529_v56 }
 0x124   :  { %v188_v38 = vmul.f32 1.442695, %v185_v37 }
 0x125   :  { %v204_v61 = vmul.f32 1.442695, %v201_v58  ;;  %v212_v6 = vmul.f32 1.442695, %v209_v62 }
 0x126   :  { %317 = vpow2.f32 %v188_v38 }
 0x12b   :  { %v312_v39 = vpop.eup %311 }
 0x12c   :  { %v79_v40 = vsel %vm54_vm0, %v312_v39, 0.0 }
 0x12d   :  { %80 = vadd.xlane.f32.xlu1 %v79_v40 }
 0x12f   :  { %v314_v41 = vpop.eup %313 }
 0x130   :  { %v82_v42 = vsel %vm54_vm0, %v314_v41, 0.0  ;;  %v501_v43 = vpop.eup %315 }
 0x131   :  { %83 = vadd.xlane.f32.xlu1 %v82_v42  ;;  %v190_v44 = vsel %vm54_vm0, %v501_v43, 0.0 }
 0x133   :  { %v505_v45 = vpop.eup %317 }
 0x134   :  { %v193_v46 = vsel %vm54_vm0, %v505_v45, 0.0 }
 0x135   :  { %191 = vadd.xlane.f32.xlu1 %v190_v44 }
 0x139   :  { %194 = vadd.xlane.f32.xlu1 %v193_v46 }
 0x13d   :  { %64 = vadd.xlane.f32.xlu1 %v63_v48 }
 0x141   :  { %67 = vadd.xlane.f32.xlu1 %v66_v50 }
 0x145   :  { %175 = vadd.xlane.f32.xlu1 %v174_v52 }
 0x1b6   :  { %v519_v53 = vpop.xlane.xlu1 %80 }
 0x1b7   :  { %319 = vlog2.f32 %v519_v53 }
 0x1b8   :  { %321 = vrcp.f32 %v519_v53 }
 0x1ba   :  { %v523_v54 = vpop.xlane.xlu1 %83 }
 0x1bb   :  { %323 = vlog2.f32 %v523_v54 }
 0x1bc   :  { %325 = vrcp.f32 %v523_v54 }
 0x1be   :  { %v532_v57 = vpop.xlane.xlu1 %191 }
 0x1bf   :  { %327 = vlog2.f32 %v532_v57 }
 0x1c0   :  { %329 = vrcp.f32 %v532_v57 }
 0x1c2   :  { %v537_v59 = vpop.xlane.xlu1 %194 }
 0x1c3   :  { %331 = vlog2.f32 %v537_v59 }
 0x1c4   :  { %v320_v60 = vpop.eup %319  ;;  %333 = vrcp.f32 %v537_v59 }
 0x1c5   :  { %v322_v63 = vpop.eup %321  ;;  %v86_v0 = vmul.f32 0.6931472, %v320_v60  ;;  %335 = vpow2.f32 %v204_v61 }
 0x1c6   :  { %v543_v1 = vpop.xlane.xlu1 %64  ;;  %v115_v2 = vmul.f32 %v322_v63, %v312_v39  ;;  %337 = vpow2.f32 %v212_v6 }
 0x1c7   :  { %v547_v3 = vmax.f32 %v469_v23, %v543_v1  ;;  %v117_v4 = vsub.f32 %v474_v25, %v86_v0 }
 0x1c8   :  { %v324_v5 = vpop.eup %323  ;;  %v293_v7 = vadd.f32 -0.032258064, %v115_v2 }
 0x1c9   :  { %v326_v9 = vpop.eup %325  ;;  %v88_v10 = vmul.f32 0.6931472, %v324_v5  ;;  %v89_v11 = vsub.f32 %v469_v23, %v547_v3  ;;  %v97_v12 = vsub.f32 %v543_v1, %v547_v3 }
 0x1ca   :  { %v554_v13 = vpop.xlane.xlu1 %67  ;;  %v121_v14 = vmul.f32 %v293_v7, %v117_v4  ;;  %v116_v15 = vmul.f32 %v326_v9, %v314_v41 }
 0x1cb   :  { %v91_v17 = vmul.f32 1.442695, %v89_v11  ;;  %v99_v18 = vmul.f32 1.442695, %v97_v12  ;;  %v558_v19 = vmax.f32 %v483_v29, %v554_v13  ;;  %v118_v20 = vsub.f32 %v489_v31, %v88_v10 }
 0x1cc   :  { %v328_v21 = vpop.eup %327  ;;  %v123_v22 = vsel %vm442_vm1, 0.0, %v121_v14  ;;  %v294_v23 = vadd.f32 -0.032258064, %v116_v15 }
 0x1cd   :  { %v330_v25 = vpop.eup %329  ;;  %v197_v27 = vmul.f32 0.6931472, %v328_v21  ;;  %339 = vpow2.f32 %v91_v17  ;;  %v90_v28 = vsub.f32 %v483_v29, %v558_v19  ;;  %v98_v30 = vsub.f32 %v554_v13, %v558_v19 }
 0x1ce   :  { %341 = vpow2.f32 %v99_v18  ;;  %v125_v32 = vsel %vm54_vm0, %v123_v22, 0.0  ;;  %v568_v33 = vpop.xlane.xlu1 %175  ;;  %v122_v31 = vmul.f32 %v294_v23, %v118_v20  ;;  %v226_v34 = vmul.f32 %v330_v25, %v501_v43 }
 0x1cf   :  { %v93_v35 = vmul.f32 1.442695, %v90_v28  ;;  %v101_v37 = vmul.f32 1.442695, %v98_v30  ;;  %126 = vadd.xlane.f32.xlu1 %v125_v32  ;;  %v180_v38 = vmax.f32 %v471_v24, %v568_v33  ;;  %v228_v39 = vsub.f32 %v478_v26, %v197_v27 }
 0x1d0   :  { %v332_v29 = vpop.eup %331  ;;  %v124_v40 = vsel %vm456_vm2, 0.0, %v122_v31  ;;  %v295_v41 = vadd.f32 -0.032258064, %v226_v34 }
 0x1d1   :  { %v334_v42 = vpop.eup %333  ;;  %v199_v44 = vmul.f32 0.6931472, %v332_v29  ;;  %343 = vpow2.f32 %v93_v35  ;;  %v200_v46 = vsub.f32 %v471_v24, %v180_v38  ;;  %v208_v43 = vsub.f32 %v568_v33, %v180_v38 }
 0x1d2   :  { %v128_v47 = vsel %vm54_vm0, %v124_v40, 0.0  ;;  %v232_v48 = vmul.f32 %v295_v41, %v228_v39  ;;  %v227_v49 = vmul.f32 %v334_v42, %v505_v45  ;;  %345 = vpow2.f32 %v101_v37  ;;  %v336_v60 = vpop.eup %335 }
 0x1d3   :  { %v202_v50 = vmul.f32 1.442695, %v200_v46  ;;  %v210_v26 = vmul.f32 1.442695, %v208_v43  ;;  %129 = vadd.xlane.f32.xlu0 %v128_v47  ;;  %v229_v51 = vsub.f32 %v494_v36, %v199_v44  ;;  %v207_v61 = vmul.f32 %v336_v60, %v537_v59  ;;  %v338_v63 = vpop.eup %337 }
 0x1d4   :  { %v234_v52 = vsel %vm442_vm1, 0.0, %v232_v48  ;;  %v296_v58 = vadd.f32 -0.032258064, %v227_v49 }
 0x1d5   :  { %347 = vpow2.f32 %v202_v50  ;;  %v236_v24 = vsel %vm54_vm0, %v234_v52, 0.0  ;;  %v215_v2 = vadd.f32 %v338_v63, %v207_v61 }
 0x1d6   :  { %237 = vadd.xlane.f32.xlu1 %v236_v24  ;;  %v233_v62 = vmul.f32 %v296_v58, %v229_v51  ;;  %349 = vpow2.f32 %v210_v26 }
 0x1d7   :  { %351 = vlog2.f32 %v215_v2 }
 0x1d8   :  { %v235_v45 = vsel %vm456_vm2, 0.0, %v233_v62 }
 0x1d9   :  { %v239_v0 = vsel %vm54_vm0, %v235_v45, 0.0 }
 0x1da   :  { %v340_v36 = vpop.eup %339  ;;  %240 = vadd.xlane.f32.xlu0 %v239_v0 }
 0x1db   :  { %v342_v8 = vpop.eup %341  ;;  %v95_v4 = vmul.f32 %v340_v36, %v519_v53 }
 0x1dd   :  { %v103_v5 = vadd.f32 %v342_v8, %v95_v4 }
 0x1de   :  { %v344_v6 = vpop.eup %343 }
 0x1df   :  { %353 = vlog2.f32 %v103_v5  ;;  %v96_v59 = vmul.f32 %v344_v6, %v523_v54  ;;  %v346_v7 = vpop.eup %345 }
 0x1e1   :  { %v104_v9 = vadd.f32 %v346_v7, %v96_v59 }
 0x1e2   :  { %v348_v10 = vpop.eup %347 }
 0x1e3   :  { %355 = vlog2.f32 %v104_v9  ;;  %v206_v16 = vmul.f32 %v348_v10, %v532_v57  ;;  %v350_v11 = vpop.eup %349 }
 0x1e4   :  { %v352_v14 = vpop.eup %351 }
 0x1e5   :  { %v214_v12 = vadd.f32 %v350_v11, %v206_v16  ;;  %v219_v18 = vmul.f32 0.6931472, %v352_v14 }
 0x1e7   :  { %357 = vlog2.f32 %v214_v12  ;;  %v221_v23 = vadd.f32 %v219_v18, %v529_v56 }
 0x1ec   :  { %v354_v15 = vpop.eup %353 }
 0x1ed   :  { %v106_v17 = vmul.f32 0.6931472, %v354_v15 }
 0x1ef   :  { %v109_v53 = vadd.f32 %v106_v17, %v547_v3  ;;  %v223_v3 = vsub.f32 %v221_v23, %v525_v55 }
 0x1f0   :  { %v356_v20 = vpop.eup %355 }
 0x1f1   :  { %v108_v21 = vmul.f32 0.6931472, %v356_v20  ;;  %v111_v22 = vsub.f32 %v109_v53, %v543_v1  ;;  %v247_v56 = vsel %vm135_vm3, %v223_v3, 0.0 }
 0x1f3   :  { %v110_v54 = vadd.f32 %v108_v21, %v558_v19  ;;  %v136_v30 = vsel %vm135_vm3, %v111_v22, 0.0 }
 0x1f4   :  { %v358_v25 = vpop.eup %357 }
 0x1f5   :  { %v112_v57 = vsub.f32 %v110_v54, %v554_v13  ;;  %v217_v27 = vmul.f32 0.6931472, %v358_v25 }
 0x1f7   :  { %v220_v28 = vadd.f32 %v217_v27, %v180_v38  ;;  %v137_v32 = vsel %vm135_vm3, %v112_v57, 0.0 }
 0x1f8   :  { %v138_v31 = vadd.f32 %v137_v32, %v136_v30 }
 0x1f9   :  { %v222_v34 = vsub.f32 %v220_v28, %v568_v33 }
 0x1fa   :  { %139 = vadd.xlane.f32.xlu1 %v138_v31 }
 0x1fb   :  { %v246_v1 = vsel %vm135_vm3, %v222_v34, 0.0 }
 0x1fc   :  { %v248_v19 = vadd.f32 %v247_v56, %v246_v1 }
 0x1fe   :  { %249 = vadd.xlane.f32.xlu1 %v248_v19 }
 0x258   :  { %v127_v13 = vpop.xlane.xlu1 %126 }
 0x259   :  { %v131_v35 = vmul.f32 0.5, %v127_v13 }
 0x25b   :  { %v150_v29 = vsel %vm135_vm3, %v131_v35, 0.0 }
 0x25c   :  { %v130_v37 = vpop.xlane.xlu0 %129 }
 0x25d   :  { %v132_v38 = vmul.f32 0.5, %v130_v37 }
 0x25f   :  { %v238_v39 = vpop.xlane.xlu1 %237  ;;  %v151_v40 = vsel %vm135_vm3, %v132_v38, 0.0 }
 0x260   :  { %v152_v55 = vadd.f32 %v151_v40, %v150_v29  ;;  %v242_v41 = vmul.f32 0.5, %v238_v39 }
 0x262   :  { %153 = vadd.xlane.f32.xlu0 %v152_v55  ;;  %v260_v44 = vsel %vm135_vm3, %v242_v41, 0.0 }
 0x263   :  { %v241_v33 = vpop.xlane.xlu0 %240 }
 0x264   :  { %v243_v42 = vmul.f32 0.5, %v241_v33 }
 0x266   :  { %v261_v46 = vsel %vm135_vm3, %v243_v42, 0.0 }
 0x267   :  { %v262_v43 = vadd.f32 %v261_v46, %v260_v44 }
 0x269   :  { %263 = vadd.xlane.f32.xlu0 %v262_v43 }
 0x283   :  { %v140_v47 = vpop.xlane.xlu1 %139 }
 0x284   :  { %v141_v48 = vrot.slane %v140_v47, 4 }
 0x286   :  { %v142_v49 = vadd.f32 %v141_v48, %v140_v47 }
 0x287   :  { %v250_v58 = vpop.xlane.xlu1 %249 }
 0x288   :  { %v143_v50 = vrot.slane %v142_v49, 2  ;;  %v251_v60 = vrot.slane %v250_v58, 4 }
 0x28a   :  { %v144_v26 = vadd.f32 %v143_v50, %v142_v49  ;;  %v252_v24 = vadd.f32 %v251_v60, %v250_v58 }
 0x28c   :  { %v145_v51 = vrot.slane %v144_v26, 1  ;;  %v253_v61 = vrot.slane %v252_v24, 2 }
 0x28e   :  { %v146_v52 = vadd.f32 %v145_v51, %v144_v26  ;;  %v254_v0 = vadd.f32 %v253_v61, %v252_v24 }
 0x290   :  { %297 = vpush %v146_v52  ;;  %v255_v5 = vrot.slane %v254_v0, 1 }
 0x292   :  { %v256_v10 = vadd.f32 %v255_v5, %v254_v0 }
 0x2c1   :  { %s298_s0 = spop %297 }
 0x2eb   :  { %v154_v62 = vpop.xlane.xlu0 %153 }
 0x2ec   :  { %v155_v45 = vrot.slane %v154_v62, 4 }
 0x2ee   :  { %v156_v63 = vadd.f32 %v155_v45, %v154_v62 }
 0x2f0   :  { %v157_v36 = vrot.slane %v156_v63, 2 }
 0x2f2   :  { %v264_v2 = vpop.xlane.xlu0 %263  ;;  %v158_v8 = vadd.f32 %v157_v36, %v156_v63 }
 0x2f3   :  { %v265_v4 = vrot.slane %v264_v2, 4 }
 0x2f4   :  { %v159_v6 = vrot.slane %v158_v8, 1 }
 0x2f5   :  { %v266_v59 = vadd.f32 %v265_v4, %v264_v2 }
 0x2f6   :  { %v160_v7 = vadd.f32 %v159_v6, %v158_v8 }
 0x2f7   :  { %v267_v9 = vrot.slane %v266_v59, 2 }
 0x2f8   :  { %299 = vpush %v160_v7 }
 0x2f9   :  { %v268_v16 = vadd.f32 %v267_v9, %v266_v59  ;;  %301 = vpush %v256_v10 }
 0x2fb   :  { %v269_v11 = vrot.slane %v268_v16, 1 }
 0x2fd   :  { %v270_v12 = vadd.f32 %v269_v11, %v268_v16 }
 0x2ff   :  { %303 = vpush %v270_v12 }
 0x329   :  { %s300_s25 = spop %299 }
 0x32a   :  { %s302_s26 = spop %301 }
 0x32b   :  { %s272_s4 = sadd.f32 %s302_s26, %s298_s0 }
 0x330   :  { %s304_s27 = spop %303 }
 0x331   :  { %s273_s28 = sadd.f32 %s304_s27, %s300_s25 }
 0x333   :  { %s274_s5 = smul.f32 0.3, %s273_s28 }
 0x335   :  { %s275_s6 = sadd.f32 %s274_s5, %s272_s4 }
 0x337   :  { %v276_v14 = vstv %s275_s6 }
 0x338   :  { %277 = vst [vmem:[#allocation5] sm:$0x1] %v276_v14 }
 0x339   :  { %390 = shalt.err (!%p387_p9)
}
 0x33a   :  { %287 = dma.vmem_to_hbm [thread:$0]  %s285_s30, 16, %s612_s3, [#allocation4]  }
 0x33b   :  { %401 = dma.done.wait [#allocation4], 16  }
 0x33c   :  { %402 = vsyncadd [#allocation4], 4294967280 }
 0x33d   :  { %291 = vsyncpa [#allocation3], 1 }
 0x33e   :  { %292 = vsyncpa [#allocation4], 1 }

</bundles_post_ra>
